<compile_context>
chip_gen: v7x
topology: tpu7x:2x2x1
jax: 0.10.0
libtpu: 0.0.40
codegen_flags: <defaults>
</compile_context>

<pallas_src>
import functools

import jax
import jax.numpy as jnp
from jax import lax
from jax.experimental import pallas as pl
from jax.experimental.pallas import tpu as pltpu


# --------------------------------------------------------------------------- hw config

@functools.lru_cache(maxsize=None)
def _tpu_config():
    """(vmem_budget_bytes, num_tensorcores, target_block_bytes) for the local TPU gen."""
    kind = ""
    try:
        kind = jax.devices()[0].device_kind.lower()
    except Exception:
        pass
    vmem_cap = None
    try:
        vmem_cap = int(pltpu.get_tpu_info().vmem_capacity_bytes)
    except Exception:
        vmem_cap = None
    if not vmem_cap or vmem_cap <= 0:
        vmem_cap = 64 << 20                      # conservative: smallest per-core VMEM (v7x)
    # v7x: 64 MiB VMEM per core, 2 TensorCores/chip.  v5e/v6e: 128 MiB, 1 TC.
    is_v7 = ("v7" in kind) or ("7x" in kind) or (vmem_cap <= (80 << 20))
    if is_v7:
        vmem_cap = min(vmem_cap, 64 << 20)
    vmem_budget = min((vmem_cap * 3) // 4, 96 << 20)   # 48 MiB on v7x, 96 MiB on v5e/v6e
    num_tcs = 2 if is_v7 else 1
    target_block = (4 << 20) if is_v7 else (2 << 20)   # raw bytes per pipelined block
    return vmem_budget, num_tcs, target_block


# --------------------------------------------------------------------------- kernels

def _standardize_fullrow_kernel(x_ref, o_ref):
    """Whole reduction row resident in VMEM: one HBM read, one HBM write.

    (x - mean) is recomputed at variance/store time instead of being materialized as a
    full-tile f32 temporary: the kernel is HBM-bound, so the extra VPU subtract is free
    filler under the DMA stream while the smaller working set keeps wider rows resident.
    """
    x = x_ref[...].astype(jnp.float32)
    n = x.shape[1]
    mean = jnp.sum(x, axis=1, keepdims=True) * jnp.float32(1.0 / n)
    # torch.std() default: unbiased (N-1).  Compile-time constant multiply, no divide.
    var = jnp.sum(jnp.square(x - mean), axis=1, keepdims=True) * jnp.float32(1.0 / (n - 1))
    # Per-row rsqrt (EUP slot) + broadcast multiply instead of a full-tile divide.
    o_ref[...] = ((x - mean) * lax.rsqrt(var)).astype(o_ref.dtype)


def _standardize_chunked_kernel(x_ref, o_ref, shift_ref, sum_ref, sumsq_ref,
                                mean_ref, rstd_ref, *, n_total):
    """Streaming-moments version for rows too wide to keep resident in VMEM.

    grid = (row_tiles, 2, hw_tiles):
      phase p == 0: walk HW forward accumulating per-row shifted sum / sum-of-squares
                    (shift = first-chunk mean, keeps the finalize numerically stable),
      phase p == 1: walk HW in REVERSE re-reading the chunks and writing the normalized
                    output (the phase-boundary block index is unchanged, so its DMA is
                    skipped and there is no prefetch bubble while the moments finalize).
    """
    p = pl.program_id(1)
    k = pl.program_id(2)
    nk = pl.num_programs(2)
    x = x_ref[...].astype(jnp.float32)

    @pl.when(p == 0)
    def _accumulate():
        @pl.when(k == 0)
        def _init():
            # Shift by the first chunk's per-row mean so the sumsq accumulation does not
            # cancel catastrophically when |mean| >> std (e.g. positive inv_depth).
            shift_ref[...] = jnp.sum(x, axis=1, keepdims=True) * jnp.float32(
                1.0 / x.shape[1])
            sum_ref[...] = jnp.zeros_like(sum_ref)
            sumsq_ref[...] = jnp.zeros_like(sumsq_ref)

        xc = x - shift_ref[...]
        sum_ref[...] += jnp.sum(xc, axis=1, keepdims=True)
        sumsq_ref[...] += jnp.sum(xc * xc, axis=1, keepdims=True)

        @pl.when(k == nk - 1)
        def _finalize():
            s1 = sum_ref[...]
            mean_c = s1 * jnp.float32(1.0 / n_total)
            var = (sumsq_ref[...] - s1 * mean_c) * jnp.float32(1.0 / (n_total - 1))
            mean_ref[...] = shift_ref[...] + mean_c
            # Clamp: rounding can make the shifted estimator marginally negative.
            rstd_ref[...] = lax.rsqrt(jnp.maximum(var, 0.0))

    @pl.when(p == 1)
    def _normalize():
        o_ref[...] = ((x - mean_ref[...]) * rstd_ref[...]).astype(o_ref.dtype)


def _row_moments_kernel(x_ref, mean_ref, m2_ref):
    """Exact per-row (mean, centered sum of squares) with the full row resident."""
    x = x_ref[...].astype(jnp.float32)
    n = x.shape[1]
    mean = jnp.sum(x, axis=1, keepdims=True) * jnp.float32(1.0 / n)
    d = x - mean
    mean_ref[...] = mean
    m2_ref[...] = jnp.sum(d * d, axis=1, keepdims=True)


def _normalize_rows_kernel(x_ref, mean_ref, rstd_ref, o_ref):
    """o = (x - mean_row) * rstd_row with per-row stats supplied as (rows, 1) inputs."""
    x = x_ref[...].astype(jnp.float32)
    o_ref[...] = ((x - mean_ref[...]) * rstd_ref[...]).astype(o_ref.dtype)


# --------------------------------------------------------------------------- tiling helpers

def _working_bytes_per_elem(itemsize):
    # 2x double-buffered input + 2x double-buffered output blocks (native dtype) plus
    # roughly one f32 temporary (the upcast x) live inside the full-row kernel body.
    return 4 * itemsize + 4


def _tile_candidates(total, gran):
    """Legal tile sizes: multiples of `gran` that divide `total`, plus `total` itself."""
    cands = {total}
    t = gran
    while t < total:
        if total % t == 0:
            cands.add(t)
        t += gran
    return sorted(cands)


def _pick_tile(total, gran, unit_bytes, *, target_bytes, max_bytes, num_parallel=1):
    """Largest tile under `target_bytes` that fits `max_bytes`.

    On multi-TensorCore parts (num_parallel > 1) tiles giving an even number of grid
    steps per core are preferred so neither core idles; on 1-TC parts no split is forced.
    """
    cands = _tile_candidates(total, gran)
    fitting = [c for c in cands if c * unit_bytes <= max_bytes]
    if not fitting:
        return None
    if num_parallel > 1:
        balanced = [c for c in fitting if (total // c) % num_parallel == 0]
        if balanced:
            fitting = balanced
    under = [c for c in fitting if c * unit_bytes <= target_bytes]
    return max(under) if under else min(fitting)


def _input_block_spec(block_shape, index_map, buffers=2):
    """BlockSpec with deeper input pipelining when supported (hides DMA jitter on v5e)."""
    if buffers > 2:
        try:
            return pl.BlockSpec(block_shape, index_map, pipeline_mode=pl.Buffered(buffers))
        except Exception:
            pass
    return pl.BlockSpec(block_shape, index_map)


# --------------------------------------------------------------------------- generic wrapper

def _rowwise_standardize(x2d, *, rows_tile=None, hw_tile=None,
                         target_block_bytes=None, vmem_budget_bytes=None):
    """Per-row (x - mean) / std (unbiased, over the last axis) of a 2-D array.

    No epsilon (torch.std parity): a constant row produces NaN/Inf output.
    """
    rows, hw = x2d.shape
    assert hw >= 2, "unbiased std needs at least 2 elements per reduction row"
    budget_default, num_tcs, target_default = _tpu_config()
    if vmem_budget_bytes is None:
        vmem_budget_bytes = budget_default
    if target_block_bytes is None:
        target_block_bytes = target_default

    itemsize = jnp.dtype(x2d.dtype).itemsize
    # Sublane packing: 8 f32 rows / 16 bf16 rows / 32 int8-fp8 rows per native tile.
    row_gran = 8 * max(1, 4 // itemsize)
    w_per_elem = _working_bytes_per_elem(itemsize)
    target_working = max(1, (target_block_bytes * w_per_elem) // itemsize)
    n_elems = rows * hw

    def vmem_limit(work):
        return int(min(vmem_budget_bytes, max(2 * work, 32 << 20)))

    # ----- fast path: whole reduction row resident in VMEM (single read + single write) -----
    if hw_tile is None or hw_tile == hw:
        rt = rows_tile
        if rt is None:
            rt = _pick_tile(rows, row_gran, hw * w_per_elem,
                            target_bytes=target_working,
                            max_bytes=vmem_budget_bytes,
                            num_parallel=num_tcs)
        if rt is not None and rt * hw * w_per_elem <= vmem_budget_bytes:
            assert rows % rt == 0 and (rt == rows or rt % row_gran == 0), (
                f"illegal rows_tile={rt} for rows={rows}")
            work = rt * hw * w_per_elem
            return pl.pallas_call(
                _standardize_fullrow_kernel,
                out_shape=jax.ShapeDtypeStruct((rows, hw), x2d.dtype),
                grid_spec=pltpu.PrefetchScalarGridSpec(
                    num_scalar_prefetch=0,
                    grid=(rows // rt,),
                    in_specs=[pl.BlockSpec((rt, hw), lambda i: (i, 0))],
                    out_specs=pl.BlockSpec((rt, hw), lambda i: (i, 0)),
                ),
                compiler_params=pltpu.CompilerParams(
                    dimension_semantics=("parallel",),
                    vmem_limit_bytes=vmem_limit(work),
                ),
                cost_estimate=pl.CostEstimate(
                    flops=5 * n_elems, transcendentals=rows,
                    bytes_accessed=2 * n_elems * itemsize),
            )(x2d)

    # ----- chunked path: stream moments over HW, then re-read (reversed) and normalize -----
    # 3 input buffers (deeper pipelining) + 2 output buffers + ~1 f32 temporary per element.
    w_chunk = 5 * itemsize + 4
    rt = rows_tile
    if rt is None:
        rt = _pick_tile(rows, row_gran, 128 * w_chunk,
                        target_bytes=max(row_gran, 512) * 128 * w_chunk,
                        max_bytes=vmem_budget_bytes, num_parallel=num_tcs)
    assert rt is not None and rows % rt == 0 and (rt == rows or rt % row_gran == 0), (
        f"illegal rows_tile={rt} for rows={rows}")

    ht = hw_tile
    if ht is None:
        ht = _pick_tile(hw, 128, rt * w_chunk,
                        target_bytes=target_working, max_bytes=vmem_budget_bytes)
    assert ht is not None, "no HW tile fits the VMEM budget; lower rows_tile or raise the budget"
    assert hw % ht == 0 and (ht == hw or ht % 128 == 0), (
        f"illegal hw_tile={ht} for hw={hw} (needs a multiple of 128 that divides H*W)")

    nk = hw // ht
    work = rt * ht * w_chunk + 5 * rt * 4  # pipelined blocks + per-row stat scratch
    assert work <= vmem_budget_bytes, "chunked block still exceeds the VMEM budget"

    kernel = functools.partial(_standardize_chunked_kernel, n_total=hw)
    return pl.pallas_call(
        kernel,
        out_shape=jax.ShapeDtypeStruct((rows, hw), x2d.dtype),
        grid_spec=pltpu.PrefetchScalarGridSpec(
            num_scalar_prefetch=0,
            grid=(rows // rt, 2, nk),
            # Phase 0 walks HW forward; phase 1 walks it in reverse so the first phase-1
            # input block equals the last phase-0 block (its DMA is skipped).
            in_specs=[_input_block_spec(
                (rt, ht),
                lambda i, p, k: (i, (1 - p) * k + p * (nk - 1 - k)),
                buffers=3)],
            # Phase 0 parks the output on block (i, nk-1) without writing it; phase 1
            # (reversed walk) overwrites (i, nk-1) at its first step, before the block
            # index ever changes, so only valid data reaches HBM and every output block
            # is written exactly once.  NOTE: the park target must stay consistent with
            # the phase-1 input walk direction.
            out_specs=pl.BlockSpec((rt, ht), lambda i, p, k: (i, (nk - 1) - p * k)),
            scratch_shapes=[pltpu.VMEM((rt, 1), jnp.float32)] * 5,
        ),
        compiler_params=pltpu.CompilerParams(
            dimension_semantics=("parallel", "arbitrary", "arbitrary"),
            vmem_limit_bytes=vmem_limit(work),
        ),
        cost_estimate=pl.CostEstimate(
            flops=7 * n_elems, transcendentals=rows,
            bytes_accessed=3 * n_elems * itemsize),
    )(x2d)


# --------------------------------------------------------------------------- grouped wrapper

def _standardize_grouped_rows(x2d, group_size, *, vmem_budget_bytes, target_block_bytes,
                              num_tcs):
    """Standardize groups of `group_size` consecutive rows of x2d with shared statistics.

    Used by relative_context when B is too small for sublane-dense (B, Ch*H*W) blocks:
    exact (mean, M2) partial moments are computed per (B, Ch) row on the sublane-dense
    (B*Ch, H*W) view, combined per batch with a tiny pooled-variance reduce in XLA, and
    a second embarrassingly-parallel Pallas pass applies the normalization.
    Returns None when the per-row block does not fit the VMEM budget (caller falls back).
    """
    rows, hw = x2d.shape
    itemsize = jnp.dtype(x2d.dtype).itemsize
    row_gran = 8 * max(1, 4 // itemsize)
    w_per_elem = _working_bytes_per_elem(itemsize)
    target_working = max(1, (target_block_bytes * w_per_elem) // itemsize)

    rt = _pick_tile(rows, row_gran, hw * w_per_elem,
                    target_bytes=target_working, max_bytes=vmem_budget_bytes,
                    num_parallel=num_tcs)
    if rt is None or rt * hw * w_per_elem > vmem_budget_bytes:
        return None
    assert rows % rt == 0 and (rt == rows or rt % row_gran == 0)

    work = rt * hw * w_per_elem
    vmem_limit = int(min(vmem_budget_bytes, max(2 * work, 32 << 20)))
    n_elems = rows * hw
    grid = (rows // rt,)

    # Pass 1: exact per-row moments.
    mean_r, m2_r = pl.pallas_call(
        _row_moments_kernel,
        out_shape=(jax.ShapeDtypeStruct((rows, 1), jnp.float32),
                   jax.ShapeDtypeStruct((rows, 1), jnp.float32)),
        grid_spec=pltpu.PrefetchScalarGridSpec(
            num_scalar_prefetch=0,
            grid=grid,
            in_specs=[pl.BlockSpec((rt, hw), lambda i: (i, 0))],
            out_specs=(pl.BlockSpec((rt, 1), lambda i: (i, 0)),
                       pl.BlockSpec((rt, 1), lambda i: (i, 0))),
        ),
        compiler_params=pltpu.CompilerParams(
            dimension_semantics=("parallel",),
            vmem_limit_bytes=vmem_limit,
        ),
        cost_estimate=pl.CostEstimate(
            flops=4 * n_elems, transcendentals=0,
            bytes_accessed=n_elems * itemsize + rows * 8),
    )(x2d)

    # Tiny per-group pooled-moment combine (exact two-pass identity), done in XLA.
    n_inner = hw
    n_total = group_size * hw
    ng = rows // group_size
    mean_g = mean_r.reshape(ng, group_size)
    m2_g = m2_r.reshape(ng, group_size)
    mean_b = jnp.mean(mean_g, axis=1, keepdims=True)
    m2_b = (jnp.sum(m2_g, axis=1, keepdims=True)
            + n_inner * jnp.sum(jnp.square(mean_g - mean_b), axis=1, keepdims=True))
    var_b = m2_b * jnp.float32(1.0 / (n_total - 1))
    rstd_b = lax.rsqrt(jnp.maximum(var_b, 0.0))
    mean_rows = jnp.broadcast_to(mean_b, (ng, group_size)).reshape(rows, 1)
    rstd_rows = jnp.broadcast_to(rstd_b, (ng, group_size)).reshape(rows, 1)

    # Pass 2: sublane-dense normalize with the per-group stats broadcast per row.
    return pl.pallas_call(
        _normalize_rows_kernel,
        out_shape=jax.ShapeDtypeStruct((rows, hw), x2d.dtype),
        grid_spec=pltpu.PrefetchScalarGridSpec(
            num_scalar_prefetch=0,
            grid=grid,
            in_specs=[pl.BlockSpec((rt, hw), lambda i: (i, 0)),
                      pl.BlockSpec((rt, 1), lambda i: (i, 0)),
                      pl.BlockSpec((rt, 1), lambda i: (i, 0))],
            out_specs=pl.BlockSpec((rt, hw), lambda i: (i, 0)),
        ),
        compiler_params=pltpu.CompilerParams(
            dimension_semantics=("parallel",),
            vmem_limit_bytes=vmem_limit,
        ),
        cost_estimate=pl.CostEstimate(
            flops=2 * n_elems, transcendentals=0,
            bytes_accessed=2 * n_elems * itemsize + rows * 8),
    )(x2d, mean_rows, rstd_rows)


# --------------------------------------------------------------------------- module-level API

def relative_inv_depth(inv_depth, **tiling_kwargs):
    """RelativeInvDepth.forward: standardize each (B, Ch) slice over H*W (unbiased std).

    torch.std parity: no epsilon, a constant slice produces NaN/Inf output.
    """
    B, Ch, H, W = inv_depth.shape
    out = _rowwise_standardize(inv_depth.reshape(B * Ch, H * W), **tiling_kwargs)
    return out.reshape(B, Ch, H, W)


def relative_context(context, **tiling_kwargs):
    """RelativeContext.forward: standardize each batch element over Ch*H*W (unbiased std).

    torch.std parity: no epsilon, a constant batch element produces NaN/Inf output.
    """
    B, Ch, H, W = context.shape
    itemsize = jnp.dtype(context.dtype).itemsize
    row_gran = 8 * max(1, 4 // itemsize)
    if not tiling_kwargs and B < row_gran and Ch > 1:
        # Small batch: (B, Ch*H*W) blocks would be sublane-sparse and give <= B parallel
        # programs; re-block as (B*Ch, H*W) and combine the Ch partial moments per batch.
        vmem_budget, num_tcs, target_block = _tpu_config()
        out = _standardize_grouped_rows(
            context.reshape(B * Ch, H * W), Ch,
            vmem_budget_bytes=vmem_budget, target_block_bytes=target_block,
            num_tcs=num_tcs)
        if out is not None:
            return out.reshape(B, Ch, H, W)
    out = _rowwise_standardize(context.reshape(B, Ch * H * W), **tiling_kwargs)
    return out.reshape(B, Ch, H, W)


# --------------------------------------------------------------------------- reference & test

def _reference_rowwise(x2d):
    x = x2d.astype(jnp.float32)
    n = x.shape[1]
    mean = x.mean(axis=1, keepdims=True)
    std = jnp.sqrt(jnp.sum((x - mean) ** 2, axis=1, keepdims=True) / (n - 1))
    return ((x - mean) / std).astype(x2d.dtype)


if __name__ == "__main__":
    key = jax.random.PRNGKey(0)
    B, Ch, H, W = 2, 4, 16, 16
    k1, k2 = jax.random.split(key)
    inv_depth = jax.random.uniform(k1, (B, Ch, H, W), dtype=jnp.float32) + 0.1
    context = jax.random.normal(k2, (B, Ch, H, W), dtype=jnp.float32)

    ref_d = _reference_rowwise(inv_depth.reshape(B * Ch, H * W)).reshape(B, Ch, H, W)
    ref_c = _reference_rowwise(context.reshape(B, Ch * H * W)).reshape(B, Ch, H, W)

    # RelativeInvDepth — full-row fast path (whole H*W row resident in VMEM).
    out_d = jax.block_until_ready(relative_inv_depth(inv_depth))
    assert out_d.shape == (B, Ch, H, W)
    assert jnp.allclose(out_d, ref_d, atol=1e-4, rtol=1e-4)

    # RelativeContext — small-batch path (per-(B,Ch) moments + per-B combine + normalize).
    out_c = jax.block_until_ready(relative_context(context))
    assert jnp.allclose(out_c, ref_c, atol=1e-4, rtol=1e-4)

    # RelativeContext forced onto the generic (B, Ch*H*W) row kernel.
    out_c2 = jax.block_until_ready(relative_context(context, rows_tile=B))
    assert jnp.allclose(out_c2, ref_c, atol=1e-4, rtol=1e-4)

    # Chunked streaming-moments path (forced hw_tile < H*W) — covers the large-image regime
    # (reversed phase-1 walk, shifted-moment accumulation).
    out_chunk = jax.block_until_ready(relative_inv_depth(inv_depth, hw_tile=128))
    assert jnp.allclose(out_chunk, ref_d, atol=1e-4, rtol=1e-4)

    print("KERNEL_OK")
</pallas_src>

<mosaic_0001>
module attributes {stable_mosaic.version = 11 : i64} {
  func.func @_standardize_fullrow_kernel(%arg0: i32, %arg1: memref<8x256xf32, #tpu.memory_space<vmem>>, %arg2: memref<8x256xf32, #tpu.memory_space<vmem>>) attributes {dimension_semantics = [#tpu.dimension_semantics<parallel>], iteration_bounds = array<i64: 1>, scalar_prefetch = 0 : i64, scratch_operands = 0 : i64, tpu.core_type = #tpu.core_type<tc>, window_params = [{transform_indices = @transform_0, window_bounds = array<i64: 8, 256>}, {transform_indices = @transform_1, window_bounds = array<i64: 8, 256>}]} {
    %c0 = arith.constant 0 : index
    %c0_0 = arith.constant 0 : index
    %0 = vector.load %arg1[%c0, %c0_0] : memref<8x256xf32, #tpu.memory_space<vmem>>, vector<8x256xf32>
    %cst = arith.constant dense<0.000000e+00> : vector<8xf32>
    %1 = vector.multi_reduction <add>, %0, %cst [1] : vector<8x256xf32> to vector<8xf32>
    %2 = vector.shape_cast %1 : vector<8xf32> to vector<8x1xf32>
    %cst_1 = arith.constant 3.906250e-03 : f32
    %3 = vector.broadcast %cst_1 : f32 to vector<8x1xf32>
    %4 = arith.mulf %2, %3 : vector<8x1xf32>
    %5 = vector.broadcast %4 : vector<8x1xf32> to vector<8x256xf32>
    %6 = arith.subf %0, %5 : vector<8x256xf32>
    %7 = arith.mulf %6, %6 : vector<8x256xf32>
    %cst_2 = arith.constant dense<0.000000e+00> : vector<8xf32>
    %8 = vector.multi_reduction <add>, %7, %cst_2 [1] : vector<8x256xf32> to vector<8xf32>
    %9 = vector.shape_cast %8 : vector<8xf32> to vector<8x1xf32>
    %cst_3 = arith.constant 0.00392156886 : f32
    %10 = vector.broadcast %cst_3 : f32 to vector<8x1xf32>
    %11 = arith.mulf %9, %10 : vector<8x1xf32>
    %12 = vector.broadcast %4 : vector<8x1xf32> to vector<8x256xf32>
    %13 = arith.subf %0, %12 : vector<8x256xf32>
    %14 = math.rsqrt %11 : vector<8x1xf32>
    %15 = vector.broadcast %14 : vector<8x1xf32> to vector<8x256xf32>
    %16 = arith.mulf %13, %15 : vector<8x256xf32>
    %c0_4 = arith.constant 0 : index
    %c0_5 = arith.constant 0 : index
    %17 = vector.load %arg2[%c0_4, %c0_5] : memref<8x256xf32, #tpu.memory_space<vmem>>, vector<8x256xf32>
    tpu.vector_store %arg2[%c0_4, %c0_5], %16 {strides = array<i32>} : memref<8x256xf32, #tpu.memory_space<vmem>>, vector<8x256xf32>,
    return
  }
  func.func @transform_0(%arg0: i32) -> (i32, i32) {
    %c0_i32 = arith.constant 0 : i32
    %c0_i32_0 = arith.constant 0 : i32
    return %arg0, %c0_i32 : i32, i32
  }
  func.func @transform_1(%arg0: i32) -> (i32, i32) {
    %c0_i32 = arith.constant 0 : i32
    %c0_i32_0 = arith.constant 0 : i32
    return %arg0, %c0_i32 : i32, i32
  }
}

</mosaic_0001>

<bundles_post_ra>
// kernel: tpu_custom_call.1
= control target key start
LH: loop header
LB: loop body
LE: loop exit
PB: predicated region body
PF: predicated region fallthrough
CT: control target
= control target key end

     0   :  { %6 = vsyncpa [#allocation3], 0  ;;  %s143_s0 = inlined_call_operand.hbm [shape: f32[8,256], index: 0, kind: input, shape index: {}]   ;;  %s144_s1 = inlined_call_operand.hbm [shape: f32[8,256], index: 1, kind: output, shape index: {}]  }
   0x1   :  { %7 = vsyncpa [#allocation4], 0  ;;  %s107_s6 = smov [#allocation2]   ;;  %s59_s10 = scalar_lea.hbm %s143_s0, 256 }
   0x2   :  { %s14_s7 = sshll.u32 %s107_s6, 4  ;;  %p60_p0 = scmp.ne.s32.totalorder %s143_s0, %s59_s10  ;;  %s15_s7 = int_to_ptr.vmem [resolvable:$true] %s14_s7 }
   0x3   :  { %p63_p1 = scmp.lt.u32.totalorder %s59_s10, %s143_s0 }
   0x5   :  { %p65_p2 = pnand %p63_p1, %p60_p0 }
   0x7   :  { %68 = shalt.err (!%p65_p2)
}
   0x8   :  { %s69_s15 = scalar_lea.vmem %s15_s7, 256  ;;  %p74_p4 = scmp.lt.s32.totalorder %s15_s7, %s15_s7 }
   0x9   :  { %p70_p3 = scmp.ne.s32.totalorder %s15_s7, %s69_s15  ;;  %p75_p5 = scmp.lt.s32.totalorder %s69_s15, %s69_s15 }
   0xb   :  { %p76_p6 = por %p75_p5, %p74_p4 }
   0xd   :  { %p77_p7 = pnand %p76_p6, %p70_p3 }
   0xf   :  { %80 = shalt.err (!%p77_p7)
}
  0x10   :  { %17 = dma.hbm_to_vmem [thread:$0]  %s143_s0, 256, %s15_s7, [#allocation3]  }
  0x11   :  { %103 = dma.done.wait [#allocation3], 256  }
  0x12   :  { %104 = vsyncadd [#allocation3], 4294967040  ;;  %v21_v0 = vld [vmem:[#allocation2] sm:$0xff]  ;;  %v22_v1 = vld [vmem:[#allocation2 + $0x8] sm:$0xff]  ;;  %s108_s18 = smov [#allocation5]  }
  0x13   :  { %v23_v2 = vadd.f32 %v22_v1, %v21_v0  ;;  %s46_s19 = sshll.u32 %s108_s18, 4  ;;  %s47_s19 = int_to_ptr.vmem [resolvable:$true] %s46_s19 }
  0x14   :  { %s81_s0 = scalar_lea.vmem %s47_s19, 256  ;;  %p86_p9 = scmp.lt.s32.totalorder %s47_s19, %s47_s19 }
  0x15   :  { %24 = vadd.xlane.f32.xlu0 %v23_v2  ;;  %p82_p8 = scmp.ne.s32.totalorder %s47_s19, %s81_s0  ;;  %p87_p10 = scmp.lt.s32.totalorder %s81_s0, %s81_s0 }
  0x17   :  { %p88_p11 = por %p87_p10, %p86_p9 }
  0x19   :  { %p89_p12 = pnand %p88_p11, %p82_p8 }
  0xa2   :  { %v25_v3 = vpop.xlane.xlu0 %24 }
  0xa3   :  { %v26_v4 = vmul.f32 0.00390625, %v25_v3 }
  0xa5   :  { %v27_v5 = vsub.f32 %v21_v0, %v26_v4  ;;  %v28_v6 = vsub.f32 %v22_v1, %v26_v4 }
  0xa7   :  { %v29_v7 = vmul.f32 %v27_v5, %v27_v5  ;;  %v30_v8 = vmul.f32 %v28_v6, %v28_v6 }
  0xa9   :  { %v31_v9 = vadd.f32 %v30_v8, %v29_v7 }
  0xab   :  { %32 = vadd.xlane.f32.xlu0 %v31_v9 }
 0x138   :  { %v33_v10 = vpop.xlane.xlu0 %32 }
 0x139   :  { %v34_v11 = vmul.f32 0.003921569, %v33_v10 }
 0x13b   :  { %57 = vrsqrt.f32 %v34_v11 }
 0x145   :  { %v58_v12 = vpop.eup %57 }
 0x146   :  { %v36_v13 = vmul.f32 %v58_v12, %v27_v5  ;;  %v37_v14 = vmul.f32 %v58_v12, %v28_v6 }
 0x148   :  { %38 = vst [vmem:[#allocation5] sm:$0xff] %v36_v13  ;;  %39 = vst [vmem:[#allocation5 + $0x8] sm:$0xff] %v37_v14 }
 0x149   :  { %92 = shalt.err (!%p89_p12)
}
 0x14a   :  { %s93_s22 = scalar_lea.hbm %s144_s1, 256 }
 0x14b   :  { %p94_p13 = scmp.ne.s32.totalorder %s144_s1, %s93_s22  ;;  %p97_p0 = scmp.lt.u32.totalorder %s93_s22, %s144_s1 }
 0x14d   :  { %p99_p1 = pnand %p97_p0, %p94_p13 }
 0x14f   :  { %102 = shalt.err (!%p99_p1)
}
 0x150   :  { %49 = dma.vmem_to_hbm [thread:$0]  %s47_s19, 256, %s144_s1, [#allocation4]  }
 0x151   :  { %105 = dma.done.wait [#allocation4], 256  }
 0x152   :  { %106 = vsyncadd [#allocation4], 4294967040 }
 0x153   :  { %53 = vsyncpa [#allocation3], 1 }
 0x154   :  { %54 = vsyncpa [#allocation4], 1 }

</bundles_post_ra>
